<compile_context>
chip_gen: v7x
topology: tpu7x:2x2x1
jax: 0.10.0
libtpu: 0.0.40
codegen_flags: <defaults>
</compile_context>

<pallas_src>
import math
import functools

import jax
import jax.numpy as jnp
import numpy as np
from jax.experimental import pallas as pl
from jax.experimental.pallas import tpu as pltpu


# ----------------------------- tile helpers ---------------------------------

def _pick_tile(size, pref):
    """Largest-usable tile: full extent if small, else `pref` when it divides."""
    if size <= pref:
        return size
    if size % pref == 0:
        return pref
    return size  # fall back to full extent (always a legal block)


# ----------------------------- tiled matmul ----------------------------------

def _matmul_kernel(x_ref, w_ref, o_ref, acc_ref):
    @pl.when(pl.program_id(2) == 0)
    def _():
        acc_ref[...] = jnp.zeros_like(acc_ref)

    acc_ref[...] += jnp.dot(x_ref[...], w_ref[...],
                            preferred_element_type=jnp.float32)

    @pl.when(pl.program_id(2) == pl.num_programs(2) - 1)
    def _():
        o_ref[...] = acc_ref[...].astype(o_ref.dtype)


def _linear(x2d, w_t, *, tm=256, tn=256, tk=512):
    """y = x2d @ w_t  (w_t is already (in, out) -- pre-transposed at init)."""
    M, K = x2d.shape
    K2, N = w_t.shape
    assert K == K2
    tm = _pick_tile(M, tm)
    tn = _pick_tile(N, tn)
    tk = _pick_tile(K, tk)
    grid = (M // tm, N // tn, K // tk)
    return pl.pallas_call(
        _matmul_kernel,
        out_shape=jax.ShapeDtypeStruct((M, N), x2d.dtype),
        grid_spec=pltpu.PrefetchScalarGridSpec(
            num_scalar_prefetch=0,
            grid=grid,
            in_specs=[
                pl.BlockSpec((tm, tk), lambda i, j, k: (i, k)),
                pl.BlockSpec((tk, tn), lambda i, j, k: (k, j)),
            ],
            out_specs=pl.BlockSpec((tm, tn), lambda i, j, k: (i, j)),
            scratch_shapes=[pltpu.VMEM((tm, tn), jnp.float32)],
        ),
        compiler_params=pltpu.CompilerParams(
            dimension_semantics=("parallel", "parallel", "arbitrary"),
            vmem_limit_bytes=32 * 1024 * 1024,
        ),
    )(x2d, w_t)


# ------------------------ flash attention kernel -----------------------------

def _flash_attn_kernel(q_ref, k_ref, v_ref, o_ref, m_ref, l_ref, acc_ref,
                       *, scale, start_pos, block_q, block_kv, causal):
    NEG = jnp.float32(-1e30)
    ki = pl.program_id(3)

    @pl.when(ki == 0)
    def _():
        m_ref[...] = jnp.full_like(m_ref, NEG)
        l_ref[...] = jnp.zeros_like(l_ref)
        acc_ref[...] = jnp.zeros_like(acc_ref)

    q = q_ref[0, 0]                                    # (block_q, D)
    k = k_ref[0, 0]                                    # (block_kv, D)
    v = v_ref[0, 0]                                    # (block_kv, D)

    # Fold 1/sqrt(D) into q (S*D elements instead of S*L).
    q = (q.astype(jnp.float32) * scale).astype(q.dtype)

    # QK^T on the MXU, f32 accumulation (contract on last dim of both -> no .T).
    s = jax.lax.dot_general(q, k, (((1,), (1,)), ((), ())),
                            preferred_element_type=jnp.float32)   # (bq, bkv)

    if causal:
        # In-kernel causal mask: kv position must be <= absolute query position.
        qi = pl.program_id(2)
        row = jax.lax.broadcasted_iota(jnp.int32, (block_q, block_kv), 0)
        col = jax.lax.broadcasted_iota(jnp.int32, (block_q, block_kv), 1)
        q_pos = start_pos + qi * block_q + row
        kv_pos = ki * block_kv + col
        valid = kv_pos <= q_pos
        s = jnp.where(valid, s, NEG)

    m_prev = m_ref[...]
    m_cur = jnp.max(s, axis=-1, keepdims=True)
    m_new = jnp.maximum(m_prev, m_cur)
    alpha = jnp.exp(m_prev - m_new)
    p = jnp.exp(s - m_new)
    if causal:
        # Guard fully-masked rows/blocks (keeps contributions exactly zero).
        p = jnp.where(valid, p, 0.0)

    l_ref[...] = alpha * l_ref[...] + jnp.sum(p, axis=-1, keepdims=True)
    acc_ref[...] = alpha * acc_ref[...] + jnp.dot(
        p.astype(v.dtype), v, preferred_element_type=jnp.float32)
    m_ref[...] = m_new

    @pl.when(ki == pl.num_programs(3) - 1)
    def _():
        inv_l = pl.reciprocal(l_ref[...], approx=True)
        o_ref[0, 0] = (acc_ref[...] * inv_l).astype(o_ref.dtype)


def flash_attention(q, k, v, *, scale, n_rep, start_pos, causal,
                    block_q=256, block_kv=512):
    """q: (B, H, S, D); k/v: (B, H_kv, L, D)  ->  (B, H, S, D)."""
    B, H, S, D = q.shape
    _, H_kv, L, _ = k.shape
    block_q = _pick_tile(S, block_q)
    block_kv = _pick_tile(L, block_kv)
    grid = (B, H, S // block_q, L // block_kv)

    kernel = functools.partial(
        _flash_attn_kernel, scale=scale, start_pos=start_pos,
        block_q=block_q, block_kv=block_kv, causal=causal)

    # TODO(synk): for head_dim < 128, pack several heads into the lane dim for
    # lane-dense stores; at real llama sizes head_dim=128 is already lane-dense.
    return pl.pallas_call(
        kernel,
        out_shape=jax.ShapeDtypeStruct((B, H, S, D), q.dtype),
        grid_spec=pltpu.PrefetchScalarGridSpec(
            num_scalar_prefetch=0,
            grid=grid,
            in_specs=[
                pl.BlockSpec((1, 1, block_q, D),
                             lambda b, h, qi, ki: (b, h, qi, 0)),
                # GQA: query head h reads kv head h // n_rep (repeat_kv for free)
                pl.BlockSpec((1, 1, block_kv, D),
                             lambda b, h, qi, ki: (b, h // n_rep, ki, 0)),
                pl.BlockSpec((1, 1, block_kv, D),
                             lambda b, h, qi, ki: (b, h // n_rep, ki, 0)),
            ],
            out_specs=pl.BlockSpec((1, 1, block_q, D),
                                   lambda b, h, qi, ki: (b, h, qi, 0)),
            scratch_shapes=[
                pltpu.VMEM((block_q, 1), jnp.float32),   # running max m
                pltpu.VMEM((block_q, 1), jnp.float32),   # running sum l
                pltpu.VMEM((block_q, D), jnp.float32),   # output accumulator
            ],
        ),
        compiler_params=pltpu.CompilerParams(
            dimension_semantics=("parallel", "parallel", "parallel", "arbitrary"),
            vmem_limit_bytes=32 * 1024 * 1024,
        ),
    )(q, k, v)


# ------------------------------ JAX glue --------------------------------------

def precompute_freqs(head_dim, positions, theta=10000.0):
    inv = 1.0 / (theta ** (jnp.arange(0, head_dim, 2, dtype=jnp.float32) / head_dim))
    ang = jnp.outer(positions.astype(jnp.float32), inv)      # (S, D//2)
    return jnp.cos(ang), jnp.sin(ang)


def apply_rotary_emb(xq, xk, cos, sin):
    # x: (B, S, H, D); interleaved-complex rotation (llama view_as_complex).
    # TODO(synk): fuse into the QKV projection kernel epilogue (pltpu.roll on a
    # half-split layout) to avoid the extra HBM round-trip of Q/K.
    def rot(x):
        xf = x.astype(jnp.float32)
        xr = xf[..., 0::2]
        xi = xf[..., 1::2]
        c = cos[None, :, None, :]
        s = sin[None, :, None, :]
        out_r = xr * c - xi * s
        out_i = xr * s + xi * c
        out = jnp.stack([out_r, out_i], axis=-1).reshape(x.shape)
        return out.astype(x.dtype)
    return rot(xq), rot(xk)


class Attention:
    def __init__(self, dim, n_heads, n_kv_heads, head_dim,
                 max_batch_size, max_seq_len, key, dtype=jnp.bfloat16):
        self.dim = dim
        self.n_heads = n_heads
        self.n_kv_heads = n_kv_heads
        self.head_dim = head_dim
        self.n_rep = n_heads // n_kv_heads
        self.dtype = dtype

        k1, k2, k3, k4 = jax.random.split(key, 4)
        s = 0.1
        # torch nn.Linear weight layout: (out_features, in_features) -- kept for
        # the reference; kernels use pre-transposed / fused copies below.
        self.wq = (s * jax.random.normal(k1, (n_heads * head_dim, dim))).astype(dtype)
        self.wk = (s * jax.random.normal(k2, (n_kv_heads * head_dim, dim))).astype(dtype)
        self.wv = (s * jax.random.normal(k3, (n_kv_heads * head_dim, dim))).astype(dtype)
        self.wo = (s * jax.random.normal(k4, (dim, n_heads * head_dim))).astype(dtype)

        # Pre-transposed (in, out) weights; Q/K/V fused into a single matmul.
        self.wqkv_t = jnp.concatenate(
            [self.wq.T, self.wk.T, self.wv.T], axis=1)          # (dim, (H+2Hkv)*D)
        self.wo_t = self.wo.T                                    # (H*D, dim)

        self.cache_k = jnp.zeros(
            (max_batch_size, max_seq_len, n_kv_heads, head_dim), dtype)
        self.cache_v = jnp.zeros_like(self.cache_k)

    def forward(self, x, start_pos, cos, sin, mask):
        bsz, seqlen, _ = x.shape
        nq = self.n_heads * self.head_dim
        nkv = self.n_kv_heads * self.head_dim

        # Fused QKV projection (one tiled matmul, x read from HBM once).
        qkv = _linear(x.reshape(bsz * seqlen, self.dim), self.wqkv_t)
        xq = qkv[:, :nq].reshape(bsz, seqlen, self.n_heads, self.head_dim)
        xk = qkv[:, nq:nq + nkv].reshape(bsz, seqlen, self.n_kv_heads, self.head_dim)
        xv = qkv[:, nq + nkv:].reshape(bsz, seqlen, self.n_kv_heads, self.head_dim)

        xq, xk = apply_rotary_emb(xq, xk, cos, sin)

        # KV cache update (functional).
        # TODO(synk): use input_output_aliases / buffer donation to avoid the
        # full-cache copy of .at[].set on every step.
        self.cache_k = self.cache_k.at[:bsz, start_pos:start_pos + seqlen].set(
            xk.astype(self.cache_k.dtype))
        self.cache_v = self.cache_v.at[:bsz, start_pos:start_pos + seqlen].set(
            xv.astype(self.cache_v.dtype))
        keys = self.cache_k[:bsz, :start_pos + seqlen]       # (B, L, H_kv, D)
        values = self.cache_v[:bsz, :start_pos + seqlen]

        # (B, H, S, D) / (B, H_kv, L, D)
        # TODO(synk): index the (B, L, H_kv, D) cache layout directly from the
        # attention BlockSpec to skip these transposes.
        q_t = jnp.transpose(xq, (0, 2, 1, 3))
        k_t = jnp.transpose(keys, (0, 2, 1, 3))
        v_t = jnp.transpose(values, (0, 2, 1, 3))

        # Causal mask is generated inside the kernel; an externally supplied
        # mask is interpreted as "llama causal mask present".
        # TODO(synk): support arbitrary additive masks in-kernel if ever needed.
        causal = mask is not None
        scale = 1.0 / math.sqrt(self.head_dim)
        out = flash_attention(q_t, k_t, v_t, scale=scale, n_rep=self.n_rep,
                              start_pos=start_pos, causal=causal)

        out = jnp.transpose(out, (0, 2, 1, 3)).reshape(bsz * seqlen, -1)
        return _linear(out, self.wo_t).reshape(bsz, seqlen, self.dim)


# --------------------------- pure-JAX reference -------------------------------

def reference_forward(attn, x, start_pos, cos, sin, mask, cache_k0, cache_v0):
    f32 = jnp.float32
    bsz, seqlen, dim = x.shape
    xf = x.astype(f32)
    wq, wk, wv, wo = (attn.wq.astype(f32), attn.wk.astype(f32),
                      attn.wv.astype(f32), attn.wo.astype(f32))
    xq = jnp.einsum("bsd,od->bso", xf, wq).reshape(bsz, seqlen, attn.n_heads, attn.head_dim)
    xk = jnp.einsum("bsd,od->bso", xf, wk).reshape(bsz, seqlen, attn.n_kv_heads, attn.head_dim)
    xv = jnp.einsum("bsd,od->bso", xf, wv).reshape(bsz, seqlen, attn.n_kv_heads, attn.head_dim)
    xq, xk = apply_rotary_emb(xq, xk, cos, sin)
    cache_k = cache_k0.astype(f32).at[:bsz, start_pos:start_pos + seqlen].set(xk)
    cache_v = cache_v0.astype(f32).at[:bsz, start_pos:start_pos + seqlen].set(xv)
    keys = cache_k[:bsz, :start_pos + seqlen]
    values = cache_v[:bsz, :start_pos + seqlen]
    keys = jnp.repeat(keys, attn.n_rep, axis=2)
    values = jnp.repeat(values, attn.n_rep, axis=2)
    q = jnp.transpose(xq, (0, 2, 1, 3))
    k = jnp.transpose(keys, (0, 2, 1, 3))
    v = jnp.transpose(values, (0, 2, 1, 3))
    scores = jnp.einsum("bhsd,bhld->bhsl", q, k) / math.sqrt(attn.head_dim)
    if mask is not None:
        scores = scores + mask[None, None]
    probs = jax.nn.softmax(scores, axis=-1)
    out = jnp.einsum("bhsl,bhld->bhsd", probs, v)
    out = jnp.transpose(out, (0, 2, 1, 3)).reshape(bsz, seqlen, -1)
    return jnp.einsum("bso,do->bsd", out, wo)


# --------------------------------- main ---------------------------------------

if __name__ == "__main__":
    dim, n_heads, n_kv_heads, head_dim = 32, 4, 2, 8
    max_batch_size, max_seq_len = 2, 16
    bsz, seqlen, start_pos = 2, 8, 4
    dtype = jnp.bfloat16

    key = jax.random.PRNGKey(0)
    k_w, k_x = jax.random.split(key)

    attn = Attention(dim, n_heads, n_kv_heads, head_dim,
                     max_batch_size, max_seq_len, k_w, dtype=dtype)
    cache_k0, cache_v0 = attn.cache_k, attn.cache_v

    x = jax.random.normal(k_x, (bsz, seqlen, dim), jnp.float32).astype(dtype)

    positions = jnp.arange(start_pos, start_pos + seqlen)
    cos, sin = precompute_freqs(head_dim, positions)

    # llama-style causal mask for cached decoding: (seqlen, start_pos + seqlen)
    causal = jnp.triu(jnp.full((seqlen, seqlen), -1e9, jnp.float32), k=1)
    mask = jnp.concatenate([jnp.zeros((seqlen, start_pos), jnp.float32), causal],
                           axis=1)

    out = attn.forward(x, start_pos, cos, sin, mask)
    out = jax.block_until_ready(out)

    ref = reference_forward(attn, x, start_pos, cos, sin, mask, cache_k0, cache_v0)
    np.testing.assert_allclose(np.asarray(out.astype(jnp.float32)),
                               np.asarray(ref),
                               rtol=5e-2, atol=5e-2)

    print("KERNEL_OK")
</pallas_src>

<mosaic_0001>
module attributes {stable_mosaic.version = 11 : i64} {
  func.func @_matmul_kernel(%arg0: i32, %arg1: i32, %arg2: i32, %arg3: memref<16x32xbf16, #tpu.memory_space<vmem>>, %arg4: memref<32x64xbf16, #tpu.memory_space<vmem>>, %arg5: memref<16x64xbf16, #tpu.memory_space<vmem>>, %arg6: memref<16x64xf32, #tpu.memory_space<vmem>>) attributes {dimension_semantics = [#tpu.dimension_semantics<parallel>, #tpu.dimension_semantics<parallel>, #tpu.dimension_semantics<arbitrary>], iteration_bounds = array<i64: 1, 1, 1>, scalar_prefetch = 0 : i64, scratch_operands = 1 : i64, tpu.core_type = #tpu.core_type<tc>, window_params = [{transform_indices = @transform_0, window_bounds = array<i64: 16, 32>}, {transform_indices = @transform_1, window_bounds = array<i64: 32, 64>}, {transform_indices = @transform_2, window_bounds = array<i64: 16, 64>}]} {
    %c0_i32 = arith.constant 0 : i32
    %0 = arith.cmpi eq, %arg2, %c0_i32 : i32
    %1 = arith.extui %0 : i1 to i32
    %c0_i32_0 = arith.constant 0 : i32
    %2 = arith.cmpi ne, %1, %c0_i32_0 : i32
    scf.if %2 {
      %cst_10 = arith.constant 0.000000e+00 : f32
      %12 = vector.broadcast %cst_10 : f32 to vector<16x64xf32>
      %c0_11 = arith.constant 0 : index
      %c0_12 = arith.constant 0 : index
      %13 = vector.load %arg6[%c0_11, %c0_12] : memref<16x64xf32, #tpu.memory_space<vmem>>, vector<16x64xf32>
      tpu.vector_store %arg6[%c0_11, %c0_12], %12 {strides = array<i32>} : memref<16x64xf32, #tpu.memory_space<vmem>>, vector<16x64xf32>,
    } else {
    }
    %c0 = arith.constant 0 : index
    %c0_1 = arith.constant 0 : index
    %3 = vector.load %arg6[%c0, %c0_1] : memref<16x64xf32, #tpu.memory_space<vmem>>, vector<16x64xf32>
    %c0_2 = arith.constant 0 : index
    %c0_3 = arith.constant 0 : index
    %4 = vector.load %arg3[%c0_2, %c0_3] : memref<16x32xbf16, #tpu.memory_space<vmem>>, vector<16x32xbf16>
    %c0_4 = arith.constant 0 : index
    %c0_5 = arith.constant 0 : index
    %5 = vector.load %arg4[%c0_4, %c0_5] : memref<32x64xbf16, #tpu.memory_space<vmem>>, vector<32x64xbf16>
    %cst = arith.constant dense<0.000000e+00> : vector<16x64xf32>
    %6 = tpu.matmul %4, %5, %cst {dimension_numbers = #tpu.dot_dimension_numbers<[1], [0], [0], [1], [0, 0, 1, 1], [], []>} : vector<16x32xbf16>, vector<32x64xbf16>, vector<16x64xf32> -> vector<16x64xf32>
    %7 = arith.addf %3, %6 : vector<16x64xf32>
    %c0_6 = arith.constant 0 : index
    %c0_7 = arith.constant 0 : index
    %8 = vector.load %arg6[%c0_6, %c0_7] : memref<16x64xf32, #tpu.memory_space<vmem>>, vector<16x64xf32>
    tpu.vector_store %arg6[%c0_6, %c0_7], %7 {strides = array<i32>} : memref<16x64xf32, #tpu.memory_space<vmem>>, vector<16x64xf32>,
    %c0_i32_8 = arith.constant 0 : i32
    %9 = arith.cmpi eq, %arg2, %c0_i32_8 : i32
    %10 = arith.extui %9 : i1 to i32
    %c0_i32_9 = arith.constant 0 : i32
    %11 = arith.cmpi ne, %10, %c0_i32_9 : i32
    scf.if %11 {
      %c0_10 = arith.constant 0 : index
      %c0_11 = arith.constant 0 : index
      %12 = vector.load %arg6[%c0_10, %c0_11] : memref<16x64xf32, #tpu.memory_space<vmem>>, vector<16x64xf32>
      %13 = arith.truncf %12 : vector<16x64xf32> to vector<16x64xbf16>
      %c0_12 = arith.constant 0 : index
      %c0_13 = arith.constant 0 : index
      %14 = vector.load %arg5[%c0_12, %c0_13] : memref<16x64xbf16, #tpu.memory_space<vmem>>, vector<16x64xbf16>
      tpu.vector_store %arg5[%c0_12, %c0_13], %13 {strides = array<i32>} : memref<16x64xbf16, #tpu.memory_space<vmem>>, vector<16x64xbf16>,
    } else {
    }
    return
  }
  func.func @transform_0(%arg0: i32, %arg1: i32, %arg2: i32) -> (i32, i32) {
    %c0_i32 = arith.constant 0 : i32
    return %arg0, %arg2 : i32, i32
  }
  func.func @transform_1(%arg0: i32, %arg1: i32, %arg2: i32) -> (i32, i32) {
    %c0_i32 = arith.constant 0 : i32
    return %arg2, %arg1 : i32, i32
  }
  func.func @transform_2(%arg0: i32, %arg1: i32, %arg2: i32) -> (i32, i32) {
    %c0_i32 = arith.constant 0 : i32
    return %arg0, %arg1 : i32, i32
  }
}

</mosaic_0001>

<bundles_post_ra>
// kernel: tpu_custom_call.1
= control target key start
LH: loop header
LB: loop body
LE: loop exit
PB: predicated region body
PF: predicated region fallthrough
CT: control target
= control target key end

     0   :  { %7 = vsyncpa [#allocation4], 0  ;;  %s329_s0 = inlined_call_operand.hbm [shape: bf16[16,32], index: 0, kind: input, shape index: {}]   ;;  %s330_s1 = inlined_call_operand.hbm [shape: bf16[32,64], index: 1, kind: input, shape index: {}]   ;;  %s331_s2 = inlined_call_operand.hbm [shape: bf16[16,64], index: 2, kind: output, shape index: {}]  }
   0x1   :  { %8 = vsyncpa [#allocation7], 0 }
   0x2   :  { %9 = vsyncpa [#allocation5], 0  ;;  %s258_s9 = smov [#allocation3]   ;;  %s186_s13 = scalar_lea.hbm %s329_s0, 128 }
   0x3   :  { %s15_s10 = sshll.u32 %s258_s9, 4  ;;  %p187_p0 = scmp.ne.s32.totalorder %s329_s0, %s186_s13  ;;  %s16_s10 = int_to_ptr.vmem [resolvable:$true] %s15_s10 }
   0x4   :  { %p190_p1 = scmp.lt.u32.totalorder %s186_s13, %s329_s0 }
   0x6   :  { %p192_p2 = pnand %p190_p1, %p187_p0 }
   0x8   :  { %195 = shalt.err (!%p192_p2)
}
   0x9   :  { %s196_s18 = scalar_lea.vmem %s16_s10, 128  ;;  %p201_p4 = scmp.lt.s32.totalorder %s16_s10, %s16_s10 }
   0xa   :  { %p197_p3 = scmp.ne.s32.totalorder %s16_s10, %s196_s18  ;;  %p202_p5 = scmp.lt.s32.totalorder %s196_s18, %s196_s18 }
   0xc   :  { %p203_p6 = por %p202_p5, %p201_p4 }
   0xe   :  { %p204_p7 = pnand %p203_p6, %p197_p3 }
  0x10   :  { %207 = shalt.err (!%p204_p7)
}
  0x11   :  { %s259_s19 = smov 64   ;;  %s260_s20 = smov 4  }
  0x12   :  { %21 = dma.hbm_to_vmem [thread:$0]  %s329_s0, 128, %s16_s10, [#allocation4], %s259_s19, %s259_s19, %s260_s20  }
  0x13   :  { %s261_s23 = smov [#allocation6]   ;;  %s208_s27 = scalar_lea.hbm %s330_s1, 256 }
  0x14   :  { %s27_s24 = sshll.u32 %s261_s23, 4  ;;  %p209_p8 = scmp.ne.s32.totalorder %s330_s1, %s208_s27  ;;  %s28_s24 = int_to_ptr.vmem [resolvable:$true] %s27_s24 }
  0x15   :  { %p212_p9 = scmp.lt.u32.totalorder %s208_s27, %s330_s1 }
  0x17   :  { %p214_p10 = pnand %p212_p9, %p209_p8 }
  0x19   :  { %217 = shalt.err (!%p214_p10)
}
  0x1a   :  { %s218_s4 = scalar_lea.vmem %s28_s24, 256  ;;  %p223_p12 = scmp.lt.s32.totalorder %s28_s24, %s28_s24 }
  0x1b   :  { %p219_p11 = scmp.ne.s32.totalorder %s28_s24, %s218_s4  ;;  %p224_p13 = scmp.lt.s32.totalorder %s218_s4, %s218_s4 }
  0x1d   :  { %p225_p0 = por %p224_p13, %p223_p12 }
  0x1f   :  { %p226_p1 = pnand %p225_p0, %p219_p11 }
  0x21   :  { %229 = shalt.err (!%p226_p1)
}
  0x22   :  { %33 = dma.hbm_to_vmem [thread:$0]  %s330_s1, 256, %s28_s24, [#allocation7], %s259_s19, %s259_s19, %s260_s20  }
  0x23   :  { %252 = dma.done.wait [#allocation4], 128  }
  0x24   :  { %253 = vsyncadd [#allocation4], 4294967168 }
  0x25   :  { %254 = dma.done.wait [#allocation7], 256  }
  0x26   :  { %255 = vsyncadd [#allocation7], 4294967040  ;;  %vm45_vm0 = vcmask 523264   ;;  %v262_v0 = vmov 0.0   ;;  %vm263_vm1 = vmmov 0   ;;  %v183_v1 = vld [vmem:[#allocation6] sm:$0xff]  }
  0x27   :  { %46 = vst.msk [vmem:[#allocation2] sm:$0xff] %vm45_vm0, %v262_v0  ;;  %47 = vst.msk [vmem:[#allocation2 + $0x8] sm:$0xff] %vm45_vm0, %v262_v0  ;;  %168 = vmatprep.subr.bf16.mxu0 %v262_v0  ;;  %172 = vmatprep.mubr.msk.bf16.mxu0 %vm263_vm1, %v262_v0  ;;  %v184_v2 = vld [vmem:[#allocation6 + $0x8] sm:$0xff]   ;;  %v185_v3 = vld [vmem:[#allocation3] sm:$0xff]   ;;  %vm73_vm2 = vcmask 261120   ;;  %vm136_vm3 = vcmask 519168  }
  0x28   :  { %169 = vmatpush3.bf16.msra.mxu0 %v183_v1  ;;  %s264_s1 = smov [#allocation8]  }
  0x29   :  { %170 = vmatprep.subr.bf16.mxu0 %v262_v0  ;;  %s144_s6 = sshll.u32 %s264_s1, 4  ;;  %s145_s6 = int_to_ptr.vmem [resolvable:$true] %s144_s6 }
  0x2a   :  { %s230_s7 = scalar_lea.vmem %s145_s6, 128  ;;  %p235_p3 = scmp.lt.s32.totalorder %s145_s6, %s145_s6 }
  0x2b   :  { %p231_p2 = scmp.ne.s32.totalorder %s145_s6, %s230_s7  ;;  %p236_p4 = scmp.lt.s32.totalorder %s230_s7, %s230_s7 }
  0x2c   :  { %171 = vmatpush3.bf16.msra.mxu0 %v184_v2 }
  0x2d   :  { %p237_p5 = por %p236_p4, %p235_p3 }
  0x2e   :  { %v48_v4 = vld [vmem:[#allocation2] sm:$0xff]  ;;  %v49_v6 = vld [vmem:[#allocation2 + $0x8] sm:$0xff] }
  0x2f   :  { %173 = vmatmul.mubr.msk.bf16.vlgmr.msra.gmra.mrb[0].mxu0 %vm73_vm2, %v185_v3  ;;  %p238_p6 = pnand %p237_p5, %p231_p2 }
 0x102   :  { %v111_v5 = vpop.f32.mrb[0].mxu0 }
 0x103   :  { %v118_v7 = vadd.f32 %v111_v5, %v48_v4  ;;  %v174_v8 = vpop.f32.mrb[1].mxu0 }
 0x104   :  { %v114_v9 = vpop.f32.mrb[2].mxu0 }
 0x105   :  { %121 = vst.msk [vmem:[#allocation2] sm:$0xff] %vm45_vm0, %v118_v7  ;;  %v119_v10 = vadd.f32 %v114_v9, %v49_v6  ;;  %v175_v11 = vpop.f32.mrb[3].mxu0 }
 0x107   :  { %122 = vst.msk [vmem:[#allocation2 + $0x8] sm:$0xff] %vm45_vm0, %v119_v10 }
 0x10c   :  { %v126_v12 = vld [vmem:[#allocation2] sm:$0xff] }
 0x10d   :  { %v163_v13 = vpack.c.bf16 %v126_v12, %v126_v12 }
 0x10e   :  { %v127_v14 = vld [vmem:[#allocation2 + $0x8] sm:$0xff] }
 0x10f   :  { %v164_v15 = vpack.c.bf16 %v127_v14, %v127_v14  ;;  %137 = vst.msk [vmem:[#allocation8] sm:$0xf] %vm136_vm3, %v163_v13 }
 0x111   :  { %138 = vst.msk [vmem:[#allocation8 + $0x4] sm:$0xf] %vm136_vm3, %v164_v15 }
 0x112   :  { %241 = shalt.err (!%p238_p6)
}
 0x113   :  { %s242_s10 = scalar_lea.hbm %s331_s2, 128 }
 0x114   :  { %p243_p7 = scmp.ne.s32.totalorder %s331_s2, %s242_s10  ;;  %p246_p8 = scmp.lt.u32.totalorder %s242_s10, %s331_s2 }
 0x116   :  { %p248_p9 = pnand %p246_p8, %p243_p7 }
 0x118   :  { %251 = shalt.err (!%p248_p9)
}
 0x119   :  { %150 = dma.vmem_to_hbm [thread:$0]  %s145_s6, 128, %s331_s2, [#allocation5], %s259_s19, %s259_s19, %s260_s20  }
 0x11a   :  { %256 = dma.done.wait [#allocation5], 128  }
 0x11b   :  { %257 = vsyncadd [#allocation5], 4294967168 }
 0x11c   :  { %154 = vsyncpa [#allocation4], 1 }
 0x11d   :  { %155 = vsyncpa [#allocation7], 1 }
 0x11e   :  { %156 = vsyncpa [#allocation5], 1 }

</bundles_post_ra>
